<compile_context>
chip_gen: v5e
topology: v5e:2x2
jax: 0.10.0
libtpu: 0.0.40
codegen_flags: <defaults>
</compile_context>

<pallas_src>
import functools
import math

import jax
import jax.numpy as jnp
from jax.experimental import pallas as pl
from jax.experimental.pallas import tpu as pltpu

_LANE = 128


def _round_up(x, m):
    return ((x + m - 1) // m) * m


def _pad2(x, rows, cols):
    r, c = x.shape
    return jnp.pad(x, ((0, rows - r), (0, cols - c)))


# ----------------------------------------------------------------------------- #
# Kernel 1: per-layer, tiled over (dst rows x src cols) with a VMEM accumulator.
# ----------------------------------------------------------------------------- #
def _sage_layer_tiled_kernel(a_ref, hk_ref, hi_ref, w_ref, b_ref, o_ref, acc_ref,
                             *, apply_relu):
    k = pl.program_id(1)

    @pl.when(k == 0)
    def _():
        acc_ref[...] = jnp.zeros_like(acc_ref)

    # Mean-aggregation partial sum: A[i, k] @ H[k]   (MXU, f32 accumulation).
    acc_ref[...] += jnp.dot(a_ref[...], hk_ref[...],
                            preferred_element_type=jnp.float32)

    @pl.when(k == pl.num_programs(1) - 1)
    def _():
        h_i = hi_ref[...]                              # self features for these rows
        agg = acc_ref[...].astype(h_i.dtype)           # aggregated neighbor features
        # Fused projection: [H | agg] @ [W_self ; W_neigh]  (one MXU matmul, K = 2*D_in)
        z = jnp.dot(jnp.concatenate([h_i, agg], axis=1), w_ref[...],
                    preferred_element_type=jnp.float32) + b_ref[...]
        if apply_relu:
            z = jnp.maximum(z, 0.0)
        o_ref[...] = z.astype(o_ref.dtype)


def sage_layer_tiled(a_p, h_p, w_cat, b_p, *, apply_relu, out_dtype, tm, tk):
    n_pad = a_p.shape[0]
    d_in_pad = h_p.shape[1]
    d_out_pad = w_cat.shape[1]
    grid = (n_pad // tm, n_pad // tk)                  # reduction (k) axis last
    kernel = functools.partial(_sage_layer_tiled_kernel, apply_relu=apply_relu)
    return pl.pallas_call(
        kernel,
        out_shape=jax.ShapeDtypeStruct((n_pad, d_out_pad), out_dtype),
        grid=grid,
        in_specs=[
            pl.BlockSpec((tm, tk), lambda i, k: (i, k)),            # A tile
            pl.BlockSpec((tk, d_in_pad), lambda i, k: (k, 0)),      # H rows for aggregation
            pl.BlockSpec((tm, d_in_pad), lambda i, k: (i, 0)),      # H rows for self term
            pl.BlockSpec((2 * d_in_pad, d_out_pad), lambda i, k: (0, 0)),   # stacked weights
            pl.BlockSpec((1, d_out_pad), lambda i, k: (0, 0)),      # bias
        ],
        out_specs=pl.BlockSpec((tm, d_out_pad), lambda i, k: (i, 0)),
        scratch_shapes=[pltpu.VMEM((tm, d_in_pad), jnp.float32)],   # aggregation accumulator
        compiler_params=pltpu.CompilerParams(
            dimension_semantics=("parallel", "arbitrary")),
    )(a_p, h_p, h_p, w_cat, b_p)


def graphsage_forward_tiled(a_norm, feats, params, *, tm=128, tk=128,
                            compute_dtype=jnp.bfloat16):
    """Scalable path: one tiled pallas_call per layer (use tm/tk ~256-512 for big N)."""
    n = feats.shape[0]
    n_pad = _round_up(n, math.lcm(tm, tk))
    a_p = _pad2(a_norm, n_pad, n_pad).astype(compute_dtype)
    h = _pad2(feats, n_pad, _round_up(feats.shape[1], _LANE)).astype(compute_dtype)
    num_layers = len(params)
    out_dim = params[-1][0].shape[1]
    for li, (w_self, w_neigh, bias) in enumerate(params):
        d_in, d_out = w_self.shape
        d_in_pad = _round_up(d_in, _LANE)
        d_out_pad = _round_up(d_out, _LANE)
        assert h.shape[1] == d_in_pad
        # Stack [W_self ; W_neigh] into one lane-padded (2*D_in_pad, D_out_pad) weight.
        w_cat = jnp.zeros((2 * d_in_pad, d_out_pad), compute_dtype)
        w_cat = w_cat.at[:d_in, :d_out].set(w_self.astype(compute_dtype))
        w_cat = w_cat.at[d_in_pad:d_in_pad + d_in, :d_out].set(
            w_neigh.astype(compute_dtype))
        b_p = jnp.zeros((1, d_out_pad), jnp.float32).at[:, :d_out].set(bias)
        last = li == num_layers - 1
        h = sage_layer_tiled(
            a_p, h, w_cat, b_p,
            apply_relu=not last,
            out_dtype=jnp.float32 if last else compute_dtype,
            tm=tm, tk=tk)
        # dropout: identity (eval mode)
    return h[:n, :out_dim]


# ----------------------------------------------------------------------------- #
# Kernel 2: all layers fused into one pallas_call (small graphs: A + H stay in VMEM).
# ----------------------------------------------------------------------------- #
def _sage_fused_kernel(x_ref, a_ref, w_ref, b_ref, o_ref, h_ref, *, num_layers):
    l = pl.program_id(0)

    @pl.when(l == 0)
    def _():
        h_ref[...] = x_ref[...]            # load initial features into resident scratch

    h = h_ref[...]
    agg = jnp.dot(a_ref[...], h, preferred_element_type=jnp.float32).astype(h.dtype)
    z = jnp.dot(jnp.concatenate([h, agg], axis=1), w_ref[0],
                preferred_element_type=jnp.float32) + b_ref[0]

    @pl.when(l < num_layers - 1)
    def _():
        h_ref[...] = jnp.maximum(z, 0.0).astype(h_ref.dtype)   # ReLU + keep resident

    @pl.when(l == num_layers - 1)
    def _():
        o_ref[...] = z.astype(o_ref.dtype)                     # last layer: no ReLU


def graphsage_forward_fused(a_norm, feats, params, *, compute_dtype=jnp.bfloat16):
    """Small-graph path: single launch; A_norm read from HBM once for all layers."""
    n, d0 = feats.shape
    num_layers = len(params)
    out_dim = params[-1][0].shape[1]
    dims = [d0] + [w.shape[1] for (w, _, _) in params]
    d_pad = max(_round_up(d, _LANE) for d in dims)
    n_pad = _round_up(n, _LANE)

    a_p = _pad2(a_norm, n_pad, n_pad).astype(compute_dtype)
    x_p = _pad2(feats, n_pad, d_pad).astype(compute_dtype)

    w_all = jnp.zeros((num_layers, 2 * d_pad, d_pad), compute_dtype)
    b_all = jnp.zeros((num_layers, 1, d_pad), jnp.float32)
    for li, (w_self, w_neigh, bias) in enumerate(params):
        d_in, d_out = w_self.shape
        w_all = w_all.at[li, :d_in, :d_out].set(w_self.astype(compute_dtype))
        w_all = w_all.at[li, d_pad:d_pad + d_in, :d_out].set(
            w_neigh.astype(compute_dtype))
        b_all = b_all.at[li, 0, :d_out].set(bias[0])

    kernel = functools.partial(_sage_fused_kernel, num_layers=num_layers)
    out = pl.pallas_call(
        kernel,
        out_shape=jax.ShapeDtypeStruct((n_pad, d_pad), jnp.float32),
        grid=(num_layers,),
        in_specs=[
            pl.BlockSpec((n_pad, d_pad), lambda l: (0, 0)),          # initial features
            pl.BlockSpec((n_pad, n_pad), lambda l: (0, 0)),          # A (fetched once)
            pl.BlockSpec((1, 2 * d_pad, d_pad), lambda l: (l, 0, 0)),  # layer weights
            pl.BlockSpec((1, 1, d_pad), lambda l: (l, 0, 0)),        # layer bias
        ],
        out_specs=pl.BlockSpec((n_pad, d_pad), lambda l: (0, 0)),
        scratch_shapes=[pltpu.VMEM((n_pad, d_pad), compute_dtype)],  # resident H
        compiler_params=pltpu.CompilerParams(
            dimension_semantics=("arbitrary",)),
    )(x_p, a_p, w_all, b_all)
    return out[:n, :out_dim]


# ----------------------------------------------------------------------------- #
# Parameters / reference / demo
# ----------------------------------------------------------------------------- #
def init_graphsage_params(key, input_dim, hidden_dim, output_dim, num_layers=4):
    """Deterministic Glorot-style init for each SAGEConv layer."""
    dims = [input_dim] + [hidden_dim] * (num_layers - 1) + [output_dim]
    params = []
    for li in range(num_layers):
        d_in, d_out = dims[li], dims[li + 1]
        key, k1, k2, k3 = jax.random.split(key, 4)
        scale = float(jnp.sqrt(6.0 / (d_in + d_out)))
        w_self = jax.random.uniform(k1, (d_in, d_out), jnp.float32, -scale, scale)
        w_neigh = jax.random.uniform(k2, (d_in, d_out), jnp.float32, -scale, scale)
        bias = jax.random.uniform(k3, (1, d_out), jnp.float32, -0.1, 0.1)
        params.append((w_self, w_neigh, bias))
    return params


def _reference_forward(a_norm, feats, params, compute_dtype=jnp.bfloat16):
    """Pure-jnp reference at the same (bf16-in / f32-accumulate) precision."""
    a = a_norm.astype(compute_dtype)
    h = feats
    for li, (w_self, w_neigh, bias) in enumerate(params):
        hh = h.astype(compute_dtype)
        agg = jnp.dot(a, hh, preferred_element_type=jnp.float32).astype(compute_dtype)
        z = (jnp.dot(hh, w_self.astype(compute_dtype), preferred_element_type=jnp.float32)
             + jnp.dot(agg, w_neigh.astype(compute_dtype), preferred_element_type=jnp.float32)
             + bias)
        h = jnp.maximum(z, 0.0) if li != len(params) - 1 else z
    return h


if __name__ == "__main__":
    # Small synthetic ('gc','e_cc','gc') homogeneous subgraph.
    N = 256          # number of 'gc' nodes (2x2 tile grid at tm=tk=128)
    INPUT_DIM = 16   # graph.nodes['gc'].data['nf'] feature dim
    HIDDEN_DIM = 32
    OUTPUT_DIM = 8
    NUM_LAYERS = 4

    key = jax.random.PRNGKey(0)
    k_adj, k_feat, k_param = jax.random.split(key, 3)

    # Random sparse-ish adjacency (dst x src), no self loops, row-normalized (mean agg).
    adj = jax.random.bernoulli(k_adj, p=0.05, shape=(N, N)).astype(jnp.float32)
    adj = adj * (1.0 - jnp.eye(N, dtype=jnp.float32))
    in_deg = adj.sum(axis=1, keepdims=True)
    a_norm = jnp.where(in_deg > 0, adj / jnp.maximum(in_deg, 1.0), 0.0)

    feats = jax.random.normal(k_feat, (N, INPUT_DIM), jnp.float32)
    params = init_graphsage_params(k_param, INPUT_DIM, HIDDEN_DIM, OUTPUT_DIM, NUM_LAYERS)

    ref = jax.block_until_ready(_reference_forward(a_norm, feats, params))

    out_fused = jax.block_until_ready(graphsage_forward_fused(a_norm, feats, params))
    out_tiled = jax.block_until_ready(graphsage_forward_tiled(a_norm, feats, params))

    assert out_fused.shape == (N, OUTPUT_DIM), out_fused.shape
    assert out_tiled.shape == (N, OUTPUT_DIM), out_tiled.shape
    assert bool(jnp.all(jnp.isfinite(out_fused)))
    assert bool(jnp.all(jnp.isfinite(out_tiled)))
    assert bool(jnp.allclose(out_fused, ref, atol=5e-2, rtol=5e-2)), \
        float(jnp.max(jnp.abs(out_fused - ref)))
    assert bool(jnp.allclose(out_tiled, ref, atol=5e-2, rtol=5e-2)), \
        float(jnp.max(jnp.abs(out_tiled - ref)))
    assert bool(jnp.allclose(out_tiled, out_fused, atol=2e-2, rtol=2e-2))

    print("KERNEL_OK")
</pallas_src>

<mosaic_0001>
module attributes {stable_mosaic.version = 11 : i64} {
  func.func @_sage_fused_kernel(%arg0: i32, %arg1: memref<256x128xbf16, #tpu.memory_space<vmem>>, %arg2: memref<256x256xbf16, #tpu.memory_space<vmem>>, %arg3: memref<1x256x128xbf16, #tpu.memory_space<vmem>>, %arg4: memref<1x1x128xf32, #tpu.memory_space<vmem>>, %arg5: memref<256x128xf32, #tpu.memory_space<vmem>>, %arg6: memref<256x128xbf16, #tpu.memory_space<vmem>>) attributes {dimension_semantics = [#tpu.dimension_semantics<arbitrary>], iteration_bounds = array<i64: 4>, scalar_prefetch = 0 : i64, scratch_operands = 1 : i64, tpu.core_type = #tpu.core_type<tc>, window_params = [{pipeline_mode = #tpu.pipeline_mode<synchronous>, transform_indices = @transform_0, window_bounds = array<i64: 256, 128>}, {pipeline_mode = #tpu.pipeline_mode<synchronous>, transform_indices = @transform_1, window_bounds = array<i64: 256, 256>}, {transform_indices = @transform_2, window_bounds = array<i64: 1, 256, 128>}, {transform_indices = @transform_3, window_bounds = array<i64: 1, 1, 128>}, {pipeline_mode = #tpu.pipeline_mode<synchronous>, transform_indices = @transform_4, window_bounds = array<i64: 256, 128>}]} {
    %c0_i32 = arith.constant 0 : i32
    %0 = arith.cmpi eq, %arg0, %c0_i32 : i32
    %1 = arith.extui %0 : i1 to i32
    %c0_i32_0 = arith.constant 0 : i32
    %2 = arith.cmpi ne, %1, %c0_i32_0 : i32
    scf.if %2 {
      %c0_14 = arith.constant 0 : index
      %c0_15 = arith.constant 0 : index
      %21 = vector.load %arg1[%c0_14, %c0_15] : memref<256x128xbf16, #tpu.memory_space<vmem>>, vector<256x128xbf16>
      %c0_16 = arith.constant 0 : index
      %c0_17 = arith.constant 0 : index
      %22 = vector.load %arg6[%c0_16, %c0_17] : memref<256x128xbf16, #tpu.memory_space<vmem>>, vector<256x128xbf16>
      tpu.vector_store %arg6[%c0_16, %c0_17], %21 {strides = array<i32>} : memref<256x128xbf16, #tpu.memory_space<vmem>>, vector<256x128xbf16>,
    } else {
    }
    %c0 = arith.constant 0 : index
    %c0_1 = arith.constant 0 : index
    %3 = vector.load %arg6[%c0, %c0_1] : memref<256x128xbf16, #tpu.memory_space<vmem>>, vector<256x128xbf16>
    %c0_2 = arith.constant 0 : index
    %c0_3 = arith.constant 0 : index
    %4 = vector.load %arg2[%c0_2, %c0_3] : memref<256x256xbf16, #tpu.memory_space<vmem>>, vector<256x256xbf16>
    %cst = arith.constant dense<0.000000e+00> : vector<256x128xf32>
    %5 = tpu.matmul %4, %3, %cst {dimension_numbers = #tpu.dot_dimension_numbers<[1], [0], [0], [1], [0, 0, 1, 1], [], []>} : vector<256x256xbf16>, vector<256x128xbf16>, vector<256x128xf32> -> vector<256x128xf32>
    %6 = arith.truncf %5 : vector<256x128xf32> to vector<256x128xbf16>
    %7 = tpu.concatenate %3, %6 in 1 : vector<256x128xbf16>, vector<256x128xbf16> -> vector<256x256xbf16>
    %c0_4 = arith.constant 0 : index
    %c0_5 = arith.constant 0 : index
    %c0_6 = arith.constant 0 : index
    %8 = vector.load %arg3[%c0_4, %c0_5, %c0_6] : memref<1x256x128xbf16, #tpu.memory_space<vmem>>, vector<1x256x128xbf16>
    %9 = vector.shape_cast %8 : vector<1x256x128xbf16> to vector<256x128xbf16>
    %cst_7 = arith.constant dense<0.000000e+00> : vector<256x128xf32>
    %10 = tpu.matmul %7, %9, %cst_7 {dimension_numbers = #tpu.dot_dimension_numbers<[1], [0], [0], [1], [0, 0, 1, 1], [], []>} : vector<256x256xbf16>, vector<256x128xbf16>, vector<256x128xf32> -> vector<256x128xf32>
    %c0_8 = arith.constant 0 : index
    %c0_9 = arith.constant 0 : index
    %c0_10 = arith.constant 0 : index
    %11 = vector.load %arg4[%c0_8, %c0_9, %c0_10] : memref<1x1x128xf32, #tpu.memory_space<vmem>>, vector<1x1x128xf32>
    %12 = vector.shape_cast %11 : vector<1x1x128xf32> to vector<1x128xf32>
    %13 = vector.broadcast %12 : vector<1x128xf32> to vector<256x128xf32>
    %14 = arith.addf %10, %13 : vector<256x128xf32>
    %c3_i32 = arith.constant 3 : i32
    %15 = arith.cmpi slt, %arg0, %c3_i32 : i32
    %16 = arith.extui %15 : i1 to i32
    %c0_i32_11 = arith.constant 0 : i32
    %17 = arith.cmpi ne, %16, %c0_i32_11 : i32
    scf.if %17 {
      %cst_14 = arith.constant 0.000000e+00 : f32
      %21 = vector.broadcast %cst_14 : f32 to vector<256x128xf32>
      %22 = arith.maximumf %14, %21 : vector<256x128xf32>
      %23 = arith.truncf %22 : vector<256x128xf32> to vector<256x128xbf16>
      %c0_15 = arith.constant 0 : index
      %c0_16 = arith.constant 0 : index
      %24 = vector.load %arg6[%c0_15, %c0_16] : memref<256x128xbf16, #tpu.memory_space<vmem>>, vector<256x128xbf16>
      tpu.vector_store %arg6[%c0_15, %c0_16], %23 {strides = array<i32>} : memref<256x128xbf16, #tpu.memory_space<vmem>>, vector<256x128xbf16>,
    } else {
    }
    %c3_i32_12 = arith.constant 3 : i32
    %18 = arith.cmpi eq, %arg0, %c3_i32_12 : i32
    %19 = arith.extui %18 : i1 to i32
    %c0_i32_13 = arith.constant 0 : i32
    %20 = arith.cmpi ne, %19, %c0_i32_13 : i32
    scf.if %20 {
      %c0_14 = arith.constant 0 : index
      %c0_15 = arith.constant 0 : index
      %21 = vector.load %arg5[%c0_14, %c0_15] : memref<256x128xf32, #tpu.memory_space<vmem>>, vector<256x128xf32>
      tpu.vector_store %arg5[%c0_14, %c0_15], %14 {strides = array<i32>} : memref<256x128xf32, #tpu.memory_space<vmem>>, vector<256x128xf32>,
    } else {
    }
    return
  }
  func.func @transform_0(%arg0: i32) -> (i32, i32) {
    %c0_i32 = arith.constant 0 : i32
    %c0_i32_0 = arith.constant 0 : i32
    %c0_i32_1 = arith.constant 0 : i32
    return %c0_i32, %c0_i32_0 : i32, i32
  }
  func.func @transform_1(%arg0: i32) -> (i32, i32) {
    %c0_i32 = arith.constant 0 : i32
    %c0_i32_0 = arith.constant 0 : i32
    %c0_i32_1 = arith.constant 0 : i32
    return %c0_i32, %c0_i32_0 : i32, i32
  }
  func.func @transform_2(%arg0: i32) -> (i32, i32, i32) {
    %c0_i32 = arith.constant 0 : i32
    %c0_i32_0 = arith.constant 0 : i32
    %c0_i32_1 = arith.constant 0 : i32
    return %arg0, %c0_i32, %c0_i32_0 : i32, i32, i32
  }
  func.func @transform_3(%arg0: i32) -> (i32, i32, i32) {
    %c0_i32 = arith.constant 0 : i32
    %c0_i32_0 = arith.constant 0 : i32
    %c0_i32_1 = arith.constant 0 : i32
    return %arg0, %c0_i32, %c0_i32_0 : i32, i32, i32
  }
  func.func @transform_4(%arg0: i32) -> (i32, i32) {
    %c0_i32 = arith.constant 0 : i32
    %c0_i32_0 = arith.constant 0 : i32
    %c0_i32_1 = arith.constant 0 : i32
    return %c0_i32, %c0_i32_0 : i32, i32
  }
}

</mosaic_0001>

<bundles_post_ra>
// kernel: tpu_custom_call.1
= control target key start
LH: loop header
LB: loop body
LE: loop exit
PB: predicated region body
PF: predicated region fallthrough
CT: control target
= control target key end

     0   :  { %s2654_s0 = inlined_call_operand.hbm [shape: bf16[256,128], index: 0, kind: input, shape index: {}]   ;;  %s2655_s1 = inlined_call_operand.hbm [shape: bf16[256,256], index: 1, kind: input, shape index: {}]   ;;  %s2656_s2 = inlined_call_operand.hbm [shape: bf16[4,256,128], index: 2, kind: input, shape index: {}]   ;;  %s2657_s3 = inlined_call_operand.hbm [shape: f32[4,1,128], index: 3, kind: input, shape index: {}]   ;;  %s2658_s4 = inlined_call_operand.hbm [shape: f32[256,128], index: 4, kind: output, shape index: {}]  }
   0x1   :  { %2660 = sst [smem:[#allocation15_spill]] %s2654_s0 }
   0x2   :  { %2661 = sst [smem:[#allocation16_spill]] %s2655_s1 }
   0x3   :  { %9 = vsyncpa [#allocation4], 0 }
   0x4   :  { %10 = vsyncpa [#allocation7], 0 }
   0x5   :  { %11 = vsyncpa [#allocation5], 0  ;;  %s2249_s15 = smov 0   ;;  %s2251_s16 = smov 0  }
   0x6   :  { %s2253_s17 = smov 0   ;;  %s2255_s18 = smov 0  }
   0x7 LB: > { %s2268_s19 = sadd.s32 4294967295, %s2213_s18   ;;  %p79_p0 = scmp.ne.s32.totalorder %s2205_s16, %s2201_s15  ;;  %s2213_s18 = sphi %s2255_s18, %s2672_s18   ;;  %s2209_s17 = sphi %s2253_s17, %s2671_s17   ;;  %s2205_s16 = sphi %s2251_s16, %s2670_s16   ;;  %s2201_s15 = sphi %s2249_s15, %s2669_s15  }
   0x8   : > { %p80_p1 = scmp.eq.s32.totalorder %s2268_s19, 0  ;;  %p1506_p2 = scmp.ge.s32.totalorder %s2213_s18, 1 }
   0x9   : > { %p137_p3 = scmp.lt.s32.totalorder %s2213_s18, 5  ;;  %p1507_p4 = scmp.ne.s32.totalorder %s2268_s19, 0 }
   0xa   : > { %p2277_p5 = por %p80_p1, %p79_p0  ;;  %s2663_s0 = sld [smem:[#allocation15_spill]] }
   0xb   : > { %p2284_p6 = pnand %p1506_p2, %p137_p3  ;;  %s2215_s25 = smov [#allocation3]  }
   0xc   : > { %s150_s26 = sshll.u32 %s2215_s25, 4  ;;  %s2297_s28 = sadd.s32 1, %s2213_s18   ;;  %s151_s26 = int_to_ptr.vmem [resolvable:$true] %s150_s26 }
   0xd   : > { %p1956_p7 = pneg %p2284_p6  ;;  %s2216_s29 = smov 64  }
   0xe   : > { %s2217_s30 = smov 4   ;;  %s63_s5 = ssub.s32 %s2213_s18, %s2297_s28 }
   0xf   : > { %p2292_p8 = pnand %p1956_p7, %p80_p1  ;;  %s66_s6 = sadd.s32 1, %s2209_s17 }
  0x10   : > { %s148_s23 = sshll.u32 %s2663_s0, 4  ;;  %p64_p9 = scmp.eq.s32.totalorder %s63_s5, 0  ;;  %s149_s23 = int_to_ptr.hbm [resolvable:$true] %s148_s23 }
  0x11   : > { %1959 = dma.hbm_to_vmem [thread:$0]  (!%p2292_p8), %s149_s23, 2048, %s151_s26, [#allocation4], %s2216_s29, %s2216_s29, %s2217_s30  }
  0x12   : > { %p73_p10 = scmp.ne.s32.totalorder %s2209_s17, %s2205_s16  ;;  %p74_p11 = scmp.eq.s32.totalorder %s2213_s18, 0 }
  0x13   : > { %p1972_p12 = scmp.lt.s32.totalorder %s2213_s18, 4  ;;  %s178_s8 = sand.u32 1, %s2213_s18  }
  0x14   : > { %s2312_s7 = scalar_select %p64_p9, %s2209_s17, %s66_s6  }
  0x15   : > { %p75_p13 = por %p74_p11, %p73_p10  ;;  %s2659_s9 = sand.u32 1, %s2209_s17  }
  0x16   : > { %s1510_s10 = sshll.u32 %s2659_s9, 7  ;;  %s1780_s11 = sshll.u32 %s2213_s18, 7 }
  0x17   : > { %s187_s14 = scalar_lea.hbm %s2656_s2, %s1780_s11  ;;  %s182_s21 = scalar_lea.vmem [#allocation8], %s1510_s10 }
  0x18   : > { %s188_s15 = sshll.u32 %s187_s14, 4  ;;  %s190_s22 = sshll.u32 %s182_s21, 4  ;;  %s189_s15 = int_to_ptr.hbm [resolvable:$true] %s188_s15  ;;  %s191_s22 = int_to_ptr.vmem [resolvable:$true] %s190_s22 }
  0x19   : > { %p2324_p0 = pnand %p1972_p12, %p75_p13  ;;  %s2667_s1 = sld [smem:[#allocation16_spill]] }
  0x1a   : > { %s2218_s6 = smov [#allocation6]   ;;  %s2331_s11 = scalar_lea.sflag [#allocation4], %s178_s8 }
  0x1b   : > { %s164_s12 = sshll.u32 %s2218_s6, 4  ;;  %s2049_s10 = sshra.s32 %s189_s15, 4  ;;  %s2050_s10 = int_to_ptr.hbm [resolvable:$true] %s2049_s10  ;;  %s165_s12 = int_to_ptr.vmem [resolvable:$true] %s164_s12 }
  0x1c   : > { %s2051_s13 = scalar_lea.hbm %s2050_s10, 128  ;;  %p2053_p3 = pneg %p2324_p0 }
  0x1d   : > { %p2052_p2 = scmp.ne.s32.totalorder %s2050_s10, %s2051_s13  ;;  %s2056_s25 = scalar_lea.hbm %s2656_s2, 512 }
  0x1e   : > { %p2057_p10 = scmp.lt.s32.totalorder %s2050_s10, %s2656_s2  ;;  %p2058_p11 = scmp.lt.s32.totalorder %s2056_s25, %s2051_s13 }
  0x1f   : > { %s162_s5 = sshll.u32 %s2667_s1, 4  ;;  %p2054_p7 = pnand %p2053_p3, %p2052_p2  ;;  %s163_s5 = int_to_ptr.hbm [resolvable:$true] %s162_s5 }
  0x20   : > { %p2059_p12 = por %p2058_p11, %p2057_p10 }
  0x21   : > { %p2055_p9 = pneg %p2054_p7 }
  0x23   : > { %p2060_p13 = pnand %p2059_p12, %p2055_p9 }
  0x25   : > { %2063 = shalt.err (!%p2060_p13)
}
  0x26   : > { %1966 = dma.hbm_to_vmem [thread:$0]  (!%p2324_p0), %s189_s15, 2048, %s191_s22, %s2331_s11, %s2216_s29, %s2216_s29, %s2217_s30  }
  0x27   : > { %s2219_s8 = smov 128   ;;  %s2220_s6 = smov 8  }
  0x28   : > { %1962 = dma.hbm_to_vmem [thread:$0]  (!%p2292_p8), %s163_s5, 4096, %s165_s12, [#allocation7], %s2219_s8, %s2219_s8, %s2220_s6  }
  0x29   : > { %s206_s13 = scalar_lea.hbm %s2657_s3, %s2213_s18  ;;  %s2668_s14 = sand.u32 1, %s2209_s17  }
  0x2a   : > { %s203_s21 = scalar_lea.vmem [#allocation9], %s2668_s14  ;;  %s208_s26 = sshll.u32 %s206_s13, 4  ;;  %s209_s26 = int_to_ptr.hbm [resolvable:$true] %s208_s26 }
  0x2b   : > { %s210_s25 = sshll.u32 %s203_s21, 4  ;;  %s2109_s0 = sshra.s32 %s209_s26, 4  ;;  %s211_s25 = int_to_ptr.vmem [resolvable:$true] %s210_s25  ;;  %s2110_s0 = int_to_ptr.hbm [resolvable:$true] %s2109_s0 }
  0x2c   : > { %s2111_s1 = scalar_lea.hbm %s2110_s0, 1  ;;  %s2116_s30 = scalar_lea.hbm %s2657_s3, 4 }
  0x2d   : > { %p2112_p2 = scmp.ne.s32.totalorder %s2110_s0, %s2111_s1  ;;  %p2117_p8 = scmp.lt.s32.totalorder %s2110_s0, %s2657_s3 }
  0x2e   : > { %p2118_p10 = scmp.lt.s32.totalorder %s2116_s30, %s2111_s1 }
  0x2f   : > { %p2114_p7 = pnand %p2112_p2, %p2053_p3 }
  0x30   : > { %p2119_p11 = por %p2118_p10, %p2117_p8 }
  0x31   : > { %p2115_p9 = pneg %p2114_p7 }
  0x33   : > { %p2120_p12 = pnand %p2119_p11, %p2115_p9 }
  0x35   : > { %2123 = shalt.err (!%p2120_p12)
}
  0x36   : > { %1969 = dma.hbm_to_vmem [thread:$0]  (!%p2324_p0), %s209_s26, 16, %s211_s25, %s2331_s11  }
  0x37   : > { %219 = sbr.rel (%p2284_p6) target bundleno = 715 (0x2cb), region = 36 }
  0x3c   : > { %2184 = dma.done.wait (%p80_p1), [#allocation4], 2048  }
  0x3d   : > { %2186 = vsyncadd (%p80_p1), [#allocation4], 4294965248 }
  0x3e   : > { %2188 = dma.done.wait (%p80_p1), [#allocation7], 4096  }
  0x3f   : > { %2190 = vsyncadd (%p80_p1), [#allocation7], 4294963200  ;;  %s231_s0 = sand.u32 1, %s2268_s19   ;;  %s233_s1 = sand.u32 1, %s2205_s16  }
  0x40   : > { %s1516_s22 = sshll.u32 %s233_s1, 7  ;;  %s232_s24 = scalar_lea.sflag [#allocation4], %s231_s0 }
  0x41   : > { %s2382_s23 = scalar_lea.vmem [#allocation8], %s1516_s22 }
  0x42   : > { %2192 = dma.done.wait (%p2277_p5), %s232_s24, 2064  }
  0x43   : > { %2194 = vsyncadd (%p2277_p5), %s232_s24, 4294965232  ;;  %s2388_s5 = scalar_lea.vmem [#allocation9], %s233_s1  ;;  %272 = sbr.rel (%p1507_p4) target bundleno = 89 (0x59), region = 56 }
  0x48   : > { %v273_v0 = vld [vmem:[#allocation3] sm:$0xff]   ;;  %v275_v1 = vld [vmem:[#allocation3 + $0x8] sm:$0xff]   ;;  %v277_v2 = vld [vmem:[#allocation3 + $0x10] sm:$0xff]  }
  0x49   : > { %305 = vst [vmem:[#allocation2] sm:$0xff] %v273_v0   ;;  %v279_v3 = vld [vmem:[#allocation3 + $0x18] sm:$0xff]   ;;  %v281_v4 = vld [vmem:[#allocation3 + $0x20] sm:$0xff]   ;;  %v283_v5 = vld [vmem:[#allocation3 + $0x28] sm:$0xff]  }
  0x4a   : > { %307 = vst [vmem:[#allocation2 + $0x8] sm:$0xff] %v275_v1   ;;  %v285_v6 = vld [vmem:[#allocation3 + $0x30] sm:$0xff]   ;;  %v287_v7 = vld [vmem:[#allocation3 + $0x38] sm:$0xff]   ;;  %v289_v8 = vld [vmem:[#allocation3 + $0x40] sm:$0xff]  }
  0x4b   : > { %309 = vst [vmem:[#allocation2 + $0x10] sm:$0xff] %v277_v2   ;;  %v291_v9 = vld [vmem:[#allocation3 + $0x48] sm:$0xff]   ;;  %v293_v10 = vld [vmem:[#allocation3 + $0x50] sm:$0xff]   ;;  %v295_v11 = vld [vmem:[#allocation3 + $0x58] sm:$0xff]  }
  0x4c   : > { %311 = vst [vmem:[#allocation2 + $0x18] sm:$0xff] %v279_v3   ;;  %v297_v12 = vld [vmem:[#allocation3 + $0x60] sm:$0xff]   ;;  %v299_v13 = vld [vmem:[#allocation3 + $0x68] sm:$0xff]   ;;  %v301_v14 = vld [vmem:[#allocation3 + $0x70] sm:$0xff]  }
  0x4d   : > { %313 = vst [vmem:[#allocation2 + $0x20] sm:$0xff] %v281_v4   ;;  %v303_v15 = vld [vmem:[#allocation3 + $0x78] sm:$0xff]  }
  0x4e   : > { %315 = vst [vmem:[#allocation2 + $0x28] sm:$0xff] %v283_v5  }
  0x4f   : > { %317 = vst [vmem:[#allocation2 + $0x30] sm:$0xff] %v285_v6  }
  0x50   : > { %319 = vst [vmem:[#allocation2 + $0x38] sm:$0xff] %v287_v7  }
  0x51   : > { %321 = vst [vmem:[#allocation2 + $0x40] sm:$0xff] %v289_v8  }
  0x52   : > { %323 = vst [vmem:[#allocation2 + $0x48] sm:$0xff] %v291_v9  }
  0x53   : > { %325 = vst [vmem:[#allocation2 + $0x50] sm:$0xff] %v293_v10  }
  0x54   : > { %327 = vst [vmem:[#allocation2 + $0x58] sm:$0xff] %v295_v11  }
  0x55   : > { %329 = vst [vmem:[#allocation2 + $0x60] sm:$0xff] %v297_v12  }
  0x56   : > { %331 = vst [vmem:[#allocation2 + $0x68] sm:$0xff] %v299_v13  }
  0x57   : > { %333 = vst [vmem:[#allocation2 + $0x70] sm:$0xff] %v301_v14  }
  0x58   : > { %335 = vst [vmem:[#allocation2 + $0x78] sm:$0xff] %v303_v15  }
  0x59 PF: > { %v2392_v16 = vld [vmem:[#allocation2 + $0x38] sm:$0xff]  ;;  %v2398_v18 = vld [vmem:[#allocation2 + $0x30] sm:$0xff]  ;;  %v2404_v20 = vld [vmem:[#allocation2 + $0x28] sm:$0xff]  ;;  %p1774_p1 = scmp.ge.s32.totalorder %s2268_s19, 3 }
  0x5a   : > { %657 = vmatpush.bf16.msra.mxu0 %v2392_v16  ;;  %v2410_v22 = vld [vmem:[#allocation2 + $0x20] sm:$0xff]  ;;  %v2416_v24 = vld [vmem:[#allocation2 + $0x18] sm:$0xff]  ;;  %v2422_v26 = vld [vmem:[#allocation2 + $0x10] sm:$0xff] }
  0x5b   : > { %v2418_v25 = vld [vmem:[#allocation2 + $0x58] sm:$0xff]  ;;  %v2424_v27 = vld [vmem:[#allocation2 + $0x50] sm:$0xff]  ;;  %v2428_v28 = vld [vmem:[#allocation2 + $0x8] sm:$0xff] }
  0x5c   : > { %v2412_v23 = vld [vmem:[#allocation2 + $0x60] sm:$0xff]  ;;  %v2430_v29 = vld [vmem:[#allocation2 + $0x48] sm:$0xff]  ;;  %v1528_v38 = vld [vmem:[#allocation6 + $0x10] sm:$0xf] }
  0x5d   : > { %v2406_v21 = vld [vmem:[#allocation2 + $0x68] sm:$0xff]  ;;  %v2432_v30 = vld [vmem:[#allocation2] sm:$0xff]  ;;  %v1800_v39 = vld [vmem:[#allocation6 + $0x14] sm:$0xf0] }
  0x5e   : > { %v2400_v19 = vld [vmem:[#allocation2 + $0x70] sm:$0xff]  ;;  %658 = vmatpush.bf16.msra.mxu0 %v2398_v18  ;;  %v2434_v31 = vld [vmem:[#allocation2 + $0x40] sm:$0xff]  ;;  %v1798_v33 = vld [vmem:[#allocation6 + $0x4] sm:$0xf0]  ;;  %v1529_v42 = vor.u32 %v1800_v39, %v1528_v38 }
  0x5f   : > { %v2394_v17 = vld [vmem:[#allocation2 + $0x78] sm:$0xff]  ;;  %v1520_v32 = vld [vmem:[#allocation6] sm:$0xf]  ;;  %v1797_v34 = vld [vmem:[#allocation6 + $0x4] sm:$0xf] }
  0x60   : > { %746 = vmatpush.bf16.msra.mxu1 %v2394_v17  ;;  %v1522_v35 = vld [vmem:[#allocation6 + $0x8] sm:$0xf0]  ;;  %v1521_v36 = vor.u32 %v1798_v33, %v1520_v32  ;;  %v1799_v40 = vld [vmem:[#allocation6 + $0x14] sm:$0xf]  ;;  %v1530_v41 = vld [vmem:[#allocation6 + $0x18] sm:$0xf0] }
  0x61   : > { %v1525_v37 = vor.u32 %v1797_v34, %v1522_v35  ;;  %v1533_v43 = vor.u32 %v1799_v40, %v1530_v41  ;;  %v1536_v44 = vld [vmem:[#allocation6 + $0x20] sm:$0xf]  ;;  %v1802_v45 = vld [vmem:[#allocation6 + $0x24] sm:$0xf0]  ;;  %v1801_v46 = vld [vmem:[#allocation6 + $0x24] sm:$0xf] }
  0x62   : > { %659 = vmatpush.bf16.msra.mxu0 %v2404_v20  ;;  %v1538_v47 = vld [vmem:[#allocation6 + $0x28] sm:$0xf0]  ;;  %v1537_v48 = vor.u32 %v1802_v45, %v1536_v44  ;;  %v1544_v50 = vld [vmem:[#allocation6 + $0x30] sm:$0xf]  ;;  %v1804_v51 = vld [vmem:[#allocation6 + $0x34] sm:$0xf0] }
  0x63   : > { %v1541_v49 = vor.u32 %v1801_v46, %v1538_v47  ;;  %v1803_v52 = vld [vmem:[#allocation6 + $0x34] sm:$0xf]  ;;  %v1546_v53 = vld [vmem:[#allocation6 + $0x38] sm:$0xf0]  ;;  %v1545_v54 = vor.u32 %v1804_v51, %v1544_v50  ;;  %v1552_v56 = vld [vmem:[#allocation6 + $0x40] sm:$0xf] }
  0x64   : > { %747 = vmatpush.bf16.msra.mxu1 %v2400_v19  ;;  %v1549_v55 = vor.u32 %v1803_v52, %v1546_v53  ;;  %v1806_v57 = vld [vmem:[#allocation6 + $0x44] sm:$0xf0]  ;;  %v1805_v58 = vld [vmem:[#allocation6 + $0x44] sm:$0xf]  ;;  %v1554_v59 = vld [vmem:[#allocation6 + $0x48] sm:$0xf0] }
  0x65   : > { %v1553_v60 = vor.u32 %v1806_v57, %v1552_v56  ;;  %v1557_v61 = vor.u32 %v1805_v58, %v1554_v59  ;;  %v1836_v62 = vld [vmem:[%s2382_s23 + $0x38] sm:$0xff]  ;;  %v1835_v0 = vld [vmem:[%s2382_s23 + $0x30] sm:$0xff]  ;;  %v1834_v1 = vld [vmem:[%s2382_s23 + $0x28] sm:$0xff] }
  0x66   : > { %660 = vmatpush.bf16.msra.mxu0 %v2410_v22  ;;  %v1844_v63 = vld [vmem:[%s2382_s23 + $0x78] sm:$0xff]  ;;  %1095 = vmatpush.bf16.msra.mxu2 %v1836_v62  ;;  %v1560_v2 = vld [vmem:[#allocation6 + $0x50] sm:$0xf]  ;;  %v1807_v4 = vld [vmem:[#allocation6 + $0x54] sm:$0xf] }
  0x67   : > { %1184 = vmatpush.bf16.msra.mxu3 %v1844_v63  ;;  %v1808_v3 = vld [vmem:[#allocation6 + $0x54] sm:$0xf0]  ;;  %v1562_v5 = vld [vmem:[#allocation6 + $0x58] sm:$0xf0]  ;;  %v1833_v8 = vld [vmem:[%s2382_s23 + $0x20] sm:$0xff] }
  0x68   : > { %748 = vmatpush.bf16.msra.mxu1 %v2406_v21  ;;  %v1561_v6 = vor.u32 %v1808_v3, %v1560_v2  ;;  %v1565_v7 = vor.u32 %v1807_v4, %v1562_v5  ;;  %v1843_v9 = vld [vmem:[%s2382_s23 + $0x70] sm:$0xff]  ;;  %v1832_v10 = vld [vmem:[%s2382_s23 + $0x18] sm:$0xff]  ;;  %v1842_v11 = vld [vmem:[%s2382_s23 + $0x68] sm:$0xff] }
  0x69   : > { %v1831_v12 = vld [vmem:[%s2382_s23 + $0x10] sm:$0xff]  ;;  %v1841_v13 = vld [vmem:[%s2382_s23 + $0x60] sm:$0xff]  ;;  %v1810_v15 = vld [vmem:[#allocation6 + $0x64] sm:$0xf0] }
  0x6a   : > { %661 = vmatpush.bf16.msra.mxu0 %v2416_v24  ;;  %1096 = vmatpush.bf16.msra.mxu2 %v1835_v0  ;;  %v1568_v14 = vld [vmem:[#allocation6 + $0x60] sm:$0xf]  ;;  %v1809_v32 = vld [vmem:[#allocation6 + $0x64] sm:$0xf]  ;;  %v1570_v33 = vld [vmem:[#allocation6 + $0x68] sm:$0xf0] }
  0x6b   : > { %1185 = vmatpush.bf16.msra.mxu3 %v1843_v9  ;;  %v1830_v34 = vld [vmem:[%s2382_s23 + $0x8] sm:$0xff]  ;;  %v1569_v35 = vor.u32 %v1810_v15, %v1568_v14  ;;  %v1829_v38 = vld [vmem:[%s2382_s23] sm:$0xff]  ;;  %v1839_v39 = vld [vmem:[%s2382_s23 + $0x50] sm:$0xff] }
  0x6c   : > { %749 = vmatpush.bf16.msra.mxu1 %v2412_v23  ;;  %v1838_v40 = vld [vmem:[%s2382_s23 + $0x48] sm:$0xff]  ;;  %v1576_v41 = vld [vmem:[#allocation6 + $0x70] sm:$0xf]  ;;  %v1578_v44 = vld [vmem:[#allocation6 + $0x78] sm:$0xf0] }
  0x6d   : > { %v1837_v45 = vld [vmem:[%s2382_s23 + $0x40] sm:$0xff]  ;;  %v1586_v51 = vld [vmem:[#allocation6 + $0x88] sm:$0xf0]  ;;  %v1815_v62 = vld [vmem:[#allocation6 + $0x94] sm:$0xf] }
  0x6e   : > { %662 = vmatpush.bf16.msra.mxu0 %v2422_v26  ;;  %1097 = vmatpush.bf16.msra.mxu2 %v1834_v1  ;;  %v1813_v50 = vld [vmem:[#allocation6 + $0x84] sm:$0xf]  ;;  %v1594_v63 = vld [vmem:[#allocation6 + $0x98] sm:$0xf0]  ;;  %v1602_v15 = vld [vmem:[#allocation6 + $0xa8] sm:$0xf0] }
  0x6f   : > { %1186 = vmatpush.bf16.msra.mxu3 %v1842_v11  ;;  %v1597_v4 = vor.u32 %v1815_v62, %v1594_v63  ;;  %v1817_v14 = vld [vmem:[#allocation6 + $0xa4] sm:$0xf] }
  0x70   : > { %750 = vmatpush.bf16.msra.mxu1 %v2418_v25 }
  0x72   : > { %663 = vmatpush.bf16.msra.mxu0 %v2428_v28  ;;  %1098 = vmatpush.bf16.msra.mxu2 %v1833_v8 }
  0x73   : > { %1187 = vmatpush.bf16.msra.mxu3 %v1841_v13  ;;  %v1818_v13 = vld [vmem:[#allocation6 + $0xa4] sm:$0xf0] }
  0x74   : > { %751 = vmatpush.bf16.msra.mxu1 %v2424_v27 }
  0x76   : > { %664 = vmatpush.bf16.msra.mxu0 %v2432_v30  ;;  %1099 = vmatpush.bf16.msra.mxu2 %v1832_v10 }
  0x78   : > { %752 = vmatpush.bf16.msra.mxu1 %v2430_v29 }
  0x79   : > { %665 = vmatmul.bf16.vlgmr.msra.gmra.mxu0 %v1521_v36  ;;  %v1573_v36 = vor.u32 %v1809_v32, %v1570_v33 }
  0x7a   : > { %1100 = vmatpush.bf16.msra.mxu2 %v1831_v12  ;;  %v1600_v12 = vld [vmem:[#allocation6 + $0xa0] sm:$0xf] }
  0x7c   : > { %753 = vmatpush.bf16.msra.mxu1 %v2434_v31 }
  0x7e   : > { %1101 = vmatpush.bf16.msra.mxu2 %v1830_v34 }
  0x7f   : > { %754 = vmatmul.bf16.vlgmr.msra.gmra.mxu1 %v1525_v37  ;;  %v1840_v37 = vld [vmem:[%s2382_s23 + $0x58] sm:$0xff] }
  0x80   : > { %1188 = vmatpush.bf16.msra.mxu3 %v1840_v37 }
  0x82   : > { %1102 = vmatpush.bf16.msra.mxu2 %v1829_v38 }
  0x84   : > { %1189 = vmatpush.bf16.msra.mxu3 %v1839_v39 }
  0x85   : > { %1103 = vmatmul.bf16.vlgmr.msra.gmra.mxu2 %v2432_v30  ;;  %v1589_v30 = vor.u32 %v1813_v50, %v1586_v51 }
  0x88   : > { %1190 = vmatpush.bf16.msra.mxu3 %v1838_v40 }
  0x89   : > { %670 = vmatmul.bf16.gmra.mxu0 %v1529_v42  ;;  %v1812_v42 = vld [vmem:[#allocation6 + $0x74] sm:$0xf0] }
  0x8a   : > { %v1577_v46 = vor.u32 %v1812_v42, %v1576_v41 }
  0x8c   : > { %1191 = vmatpush.bf16.msra.mxu3 %v1837_v45  ;;  %v1820_v45 = vld [vmem:[#allocation6 + $0xb4] sm:$0xf0] }
  0x8f   : > { %759 = vmatmul.bf16.gmra.mxu1 %v1533_v43  ;;  %v1811_v43 = vld [vmem:[#allocation6 + $0x74] sm:$0xf] }
  0x90   : > { %v1581_v47 = vor.u32 %v1811_v43, %v1578_v44  ;;  %v1608_v44 = vld [vmem:[#allocation6 + $0xb0] sm:$0xf] }
  0x91   : > { %v1609_v51 = vor.u32 %v1820_v45, %v1608_v44 }
  0x95   : > { %1108 = vmatmul.bf16.gmra.mxu2 %v2428_v28  ;;  %v1816_v28 = vld [vmem:[#allocation6 + $0x94] sm:$0xf0] }
  0x99   : > { %675 = vmatmul.bf16.gmra.mxu0 %v1537_v48  ;;  %v1584_v48 = vld [vmem:[#allocation6 + $0x80] sm:$0xf] }
  0x9f   : > { %764 = vmatmul.bf16.gmra.mxu1 %v1541_v49  ;;  %v1814_v49 = vld [vmem:[#allocation6 + $0x84] sm:$0xf0] }
  0xa0   : > { %v1585_v52 = vor.u32 %v1814_v49, %v1584_v48 }
  0xa5   : > { %1113 = vmatmul.bf16.gmra.mxu2 %v2422_v26 }
  0xa9   : > { %680 = vmatmul.bf16.gmra.mxu0 %v1545_v54 }
  0xaf   : > { %769 = vmatmul.bf16.gmra.mxu1 %v1549_v55 }
  0xb5   : > { %1118 = vmatmul.bf16.gmra.mxu2 %v2416_v24 }
  0xb9   : > { %685 = vmatmul.bf16.gmra.mxu0 %v1553_v60 }
  0xbf   : > { %774 = vmatmul.bf16.gmra.mxu1 %v1557_v61  ;;  %v1592_v61 = vld [vmem:[#allocation6 + $0x90] sm:$0xf] }
  0xc0   : > { %v1593_v3 = vor.u32 %v1816_v28, %v1592_v61  ;;  %v1821_v61 = vld [vmem:[#allocation6 + $0xc4] sm:$0xf]  ;;  %v1618_v28 = vld [vmem:[#allocation6 + $0xc8] sm:$0xf0] }
  0xc5   : > { %1123 = vmatmul.bf16.gmra.mxu2 %v2410_v22 }
  0xc9   : > { %690 = vmatmul.bf16.gmra.mxu0 %v1561_v6 }
  0xcf   : > { %779 = vmatmul.bf16.gmra.mxu1 %v1565_v7 }
  0xd5   : > { %1128 = vmatmul.bf16.gmra.mxu2 %v2404_v20 }
  0xd9   : > { %695 = vmatmul.bf16.gmra.mxu0 %v1569_v35  ;;  %v1601_v35 = vor.u32 %v1818_v13, %v1600_v12  ;;  %v1626_v12 = vld [vmem:[#allocation6 + $0xd8] sm:$0xf0] }
  0xdf   : > { %784 = vmatmul.bf16.gmra.mxu1 %v1573_v36  ;;  %v1605_v36 = vor.u32 %v1817_v14, %v1602_v15 }
  0xe5   : > { %1133 = vmatmul.bf16.gmra.mxu2 %v2398_v18 }
  0xe9   : > { %700 = vmatmul.bf16.gmra.mxu0 %v1577_v46  ;;  %v1819_v46 = vld [vmem:[#allocation6 + $0xb4] sm:$0xf] }
  0xef   : > { %789 = vmatmul.bf16.gmra.mxu1 %v1581_v47  ;;  %v1610_v47 = vld [vmem:[#allocation6 + $0xb8] sm:$0xf0] }
  0xf5   : > { %1138 = vmatmul.bf16.gmra.mxu2 %v2392_v16 }
  0xf6   : > { %v666_v53 = vpop.f32.mrf.mxu0 }
  0xf9   : > { %705 = vmatmul.bf16.gmra.mxu0 %v1585_v52  ;;  %v1613_v52 = vor.u32 %v1819_v46, %v1610_v47 }
  0xfc   : > { %v755_v54 = vpop.f32.mrf.mxu1 }
  0xfd   : > { %v756_v55 = vadd.f32 %v755_v54, %v666_v53 }
  0xfe   : > { %v668_v56 = vpop.f32.mrf.mxu0 }
  0xff   : > { %794 = vmatmul.bf16.gmra.mxu1 %v1589_v30  ;;  %v835_v58 = vpack.c.bf16 %v756_v55, %v756_v55 }
 0x101   : > { %v899_v0 = vunpack.c.l.b16 %v835_v58 }
 0x104   : > { %v757_v57 = vpop.f32.mrf.mxu1 }
 0x105   : > { %v758_v59 = vadd.f32 %v757_v57, %v668_v56  ;;  %1143 = vmatmul.bf16.gmra.mxu2 %v2434_v31 }
 0x106   : > { %v671_v5 = vpop.f32.mrf.mxu0 }
 0x107   : > { %v836_v60 = vpack.c.bf16 %v758_v59, %v758_v59  ;;  %v1616_v59 = vld [vmem:[#allocation6 + $0xc0] sm:$0xf] }
 0x109   : > { %v900_v1 = vunpack.c.l.b16 %v836_v60  ;;  %710 = vmatmul.bf16.gmra.mxu0 %v1593_v3  ;;  %v1822_v60 = vld [vmem:[#allocation6 + $0xc4] sm:$0xf0] }
 0x10b   : > { %v931_v2 = vpack.c.b16 %v900_v1, %v899_v0  ;;  %v1617_v1 = vor.u32 %v1822_v60, %v1616_v59 }
 0x10c   : > { %v760_v6 = vpop.f32.mrf.mxu1 }
 0x10d   : > { %1192 = vmatmul.bf16.vlgmr.msra.gmra.mxu3 %v931_v2  ;;  %v761_v26 = vadd.f32 %v760_v6, %v671_v5  ;;  %v1621_v2 = vor.u32 %v1821_v61, %v1618_v28 }
 0x10e   : > { %v673_v7 = vpop.f32.mrf.mxu0 }
 0x10f   : > { %799 = vmatmul.bf16.gmra.mxu1 %v1597_v4  ;;  %v837_v9 = vpack.c.bf16 %v761_v26, %v761_v26 }
 0x111   : > { %v901_v32 = vunpack.c.l.b16 %v837_v9  ;;  %v1624_v9 = vld [vmem:[#allocation6 + $0xd0] sm:$0xf] }
 0x114   : > { %v762_v8 = vpop.f32.mrf.mxu1 }
 0x115   : > { %v763_v10 = vadd.f32 %v762_v8, %v673_v7  ;;  %1148 = vmatmul.bf16.gmra.mxu2 %v2430_v29 }
 0x116   : > { %v676_v37 = vpop.f32.mrf.mxu0 }
 0x117   : > { %v838_v11 = vpack.c.bf16 %v763_v10, %v763_v10  ;;  %v1824_v10 = vld [vmem:[#allocation6 + $0xd4] sm:$0xf0] }
 0x119   : > { %v902_v33 = vunpack.c.l.b16 %v838_v11  ;;  %715 = vmatmul.bf16.gmra.mxu0 %v1601_v35  ;;  %v1823_v11 = vld [vmem:[#allocation6 + $0xd4] sm:$0xf] }
 0x11b   : > { %v932_v34 = vpack.c.b16 %v902_v33, %v901_v32  ;;  %v1625_v32 = vor.u32 %v1824_v10, %v1624_v9  ;;  %v1629_v33 = vor.u32 %v1823_v11, %v1626_v12 }
 0x11c   : > { %v765_v38 = vpop.f32.mrf.mxu1 }
 0x11d   : > { %1197 = vmatmul.bf16.gmra.mxu3 %v932_v34  ;;  %v766_v24 = vadd.f32 %v765_v38, %v676_v37 }
 0x11e   : > { %v678_v39 = vpop.f32.mrf.mxu0 }
 0x11f   : > { %804 = vmatmul.bf16.gmra.mxu1 %v1605_v36  ;;  %v839_v41 = vpack.c.bf16 %v766_v24, %v766_v24 }
 0x121   : > { %v903_v48 = vunpack.c.l.b16 %v839_v41  ;;  %v1826_v41 = vld [vmem:[#allocation6 + $0xe4] sm:$0xf0] }
 0x124   : > { %v767_v40 = vpop.f32.mrf.mxu1 }
 0x125   : > { %v768_v42 = vadd.f32 %v767_v40, %v678_v39  ;;  %v1632_v40 = vld [vmem:[#allocation6 + $0xe0] sm:$0xf]  ;;  %1153 = vmatmul.bf16.gmra.mxu2 %v2424_v27 }
 0x126   : > { %v681_v30 = vpop.f32.mrf.mxu0  ;;  %v1633_v47 = vor.u32 %v1826_v41, %v1632_v40 }
 0x127   : > { %v840_v43 = vpack.c.bf16 %v768_v42, %v768_v42  ;;  %v1825_v42 = vld [vmem:[#allocation6 + $0xe4] sm:$0xf] }
 0x129   : > { %v904_v49 = vunpack.c.l.b16 %v840_v43  ;;  %720 = vmatmul.bf16.gmra.mxu0 %v1609_v51  ;;  %v1634_v43 = vld [vmem:[#allocation6 + $0xe8] sm:$0xf0] }
 0x12b   : > { %v933_v50 = vpack.c.b16 %v904_v49, %v903_v48  ;;  %v1637_v48 = vor.u32 %v1825_v42, %v1634_v43 }
 0x12c   : > { %v770_v53 = vpop.f32.mrf.mxu1 }
 0x12d   : > { %1202 = vmatmul.bf16.gmra.mxu3 %v933_v50  ;;  %v771_v22 = vadd.f32 %v770_v53, %v681_v30 }
 0x12e   : > { %v683_v54 = vpop.f32.mrf.mxu0 }
 0x12f   : > { %809 = vmatmul.bf16.gmra.mxu1 %v1613_v52  ;;  %v841_v56 = vpack.c.bf16 %v771_v22, %v771_v22  ;;  %v1104_v22 = vpop.f32.mrf.mxu2 }
 0x131   : > { %v905_v62 = vunpack.c.l.b16 %v841_v56  ;;  %v1828_v56 = vld [vmem:[#allocation6 + $0xf4] sm:$0xf0] }
 0x134   : > { %v772_v55 = vpop.f32.mrf.mxu1 }
 0x135   : > { %v773_v57 = vadd.f32 %v772_v55, %v683_v54  ;;  %v1640_v55 = vld [vmem:[#allocation6 + $0xf0] sm:$0xf]  ;;  %1158 = vmatmul.bf16.gmra.mxu2 %v2418_v25 }
 0x136   : > { %v686_v3 = vpop.f32.mrf.mxu0  ;;  %v1641_v28 = vor.u32 %v1828_v56, %v1640_v55 }
 0x137   : > { %v842_v58 = vpack.c.bf16 %v773_v57, %v773_v57  ;;  %v1827_v57 = vld [vmem:[#allocation6 + $0xf4] sm:$0xf] }
 0x139   : > { %v906_v63 = vunpack.c.l.b16 %v842_v58  ;;  %725 = vmatmul.bf16.gmra.mxu0 %v1617_v1  ;;  %v1642_v58 = vld [vmem:[#allocation6 + $0xf8] sm:$0xf0]  ;;  %v1106_v1 = vpop.f32.mrf.mxu2 }
 0x13b   : > { %v934_v0 = vpack.c.b16 %v906_v63, %v905_v62  ;;  %v1645_v62 = vor.u32 %v1827_v57, %v1642_v58 }
 0x13c   : > { %v775_v4 = vpop.f32.mrf.mxu1 }
 0x13d   : > { %1207 = vmatmul.bf16.gmra.mxu3 %v934_v0  ;;  %v776_v20 = vadd.f32 %v775_v4, %v686_v3 }
 0x13e   : > { %v688_v5 = vpop.f32.mrf.mxu0 }
 0x13f   : > { %814 = vmatmul.bf16.gmra.mxu1 %v1621_v2  ;;  %v843_v26 = vpack.c.bf16 %v776_v20, %v776_v20 }
 0x141   : > { %v907_v13 = vunpack.c.l.b16 %v843_v26 }
 0x144   : > { %v777_v6 = vpop.f32.mrf.mxu1 }
 0x145   : > { %v778_v7 = vadd.f32 %v777_v6, %v688_v5  ;;  %v1109_v5 = vpop.f32.mrf.mxu2  ;;  %1163 = vmatmul.bf16.gmra.mxu2 %v2412_v23 }
 0x146   : > { %v691_v34 = vpop.f32.mrf.mxu0 }
 0x147   : > { %v844_v8 = vpack.c.bf16 %v778_v7, %v778_v7 }
 0x149   : > { %v908_v14 = vunpack.c.l.b16 %v844_v8  ;;  %730 = vmatmul.bf16.gmra.mxu0 %v1625_v32 }
 0x14b   : > { %v935_v15 = vpack.c.b16 %v908_v14, %v907_v13 }
 0x14c   : > { %v780_v35 = vpop.f32.mrf.mxu1 }
 0x14d   : > { %1212 = vmatmul.bf16.gmra.mxu3 %v935_v15  ;;  %v781_v18 = vadd.f32 %v780_v35, %v691_v34  ;;  %v1111_v11 = vpop.f32.mrf.mxu2 }
 0x14e   : > { %v693_v36 = vpop.f32.mrf.mxu0 }
 0x14f   : > { %819 = vmatmul.bf16.gmra.mxu1 %v1629_v33  ;;  %v845_v38 = vpack.c.bf16 %v781_v18, %v781_v18  ;;  %v2468_v18 = vld [vmem:[%s2388_s5] ss:$0 sm:$0xff] }
 0x151   : > { %v909_v44 = vunpack.c.l.b16 %v845_v38 }
 0x154   : > { %v782_v37 = vpop.f32.mrf.mxu1 }
 0x155   : > { %v783_v24 = vadd.f32 %v782_v37, %v693_v36  ;;  %v1114_v32 = vpop.f32.mrf.mxu2  ;;  %1168 = vmatmul.bf16.gmra.mxu2 %v2406_v21 }
 0x156   : > { %v696_v49 = vpop.f32.mrf.mxu0 }
 0x157   : > { %v846_v39 = vpack.c.bf16 %v783_v24, %v783_v24  ;;  %v1105_v24 = vadd.f32 %v2468_v18, %v1104_v22  ;;  %v1110_v22 = vadd.f32 %v2468_v18, %v1109_v5 }
 0x159   : > { %v910_v45 = vunpack.c.l.b16 %v846_v39  ;;  %735 = vmatmul.bf16.gmra.mxu0 %v1633_v47  ;;  %v1107_v47 = vadd.f32 %v2468_v18, %v1106_v1 }
 0x15b   : > { %v936_v46 = vpack.c.b16 %v910_v45, %v909_v44 }
 0x15c   : > { %v785_v50 = vpop.f32.mrf.mxu1 }
 0x15d   : > { %1217 = vmatmul.bf16.gmra.mxu3 %v936_v46  ;;  %v786_v16 = vadd.f32 %v785_v50, %v696_v49  ;;  %v1116_v39 = vpop.f32.mrf.mxu2 }
 0x15e   : > { %v698_v51 = vpop.f32.mrf.mxu0 }
 0x15f   : > { %824 = vmatmul.bf16.gmra.mxu1 %v1637_v48  ;;  %v847_v30 = vpack.c.bf16 %v786_v16, %v786_v16 }
 0x161   : > { %v911_v59 = vunpack.c.l.b16 %v847_v30 }
 0x164   : > { %v787_v52 = vpop.f32.mrf.mxu1 }
 0x165   : > { %v788_v53 = vadd.f32 %v787_v52, %v698_v51  ;;  %v1119_v46 = vpop.f32.mrf.mxu2  ;;  %1173 = vmatmul.bf16.gmra.mxu2 %v2400_v19 }
 0x166   : > { %v701_v63 = vpop.f32.mrf.mxu0 }
 0x167   : > { %v848_v54 = vpack.c.bf16 %v788_v53, %v788_v53 }
 0x169   : > { %v912_v60 = vunpack.c.l.b16 %v848_v54  ;;  %740 = vmatmul.bf16.gmra.mxu0 %v1641_v28  ;;  %v1112_v28 = vadd.f32 %v2468_v18, %v1111_v11 }
 0x16b   : > { %v937_v61 = vpack.c.b16 %v912_v60, %v911_v59 }
 0x16c   : > { %v790_v0 = vpop.f32.mrf.mxu1 }
 0x16d   : > { %1222 = vmatmul.bf16.gmra.mxu3 %v937_v61  ;;  %v791_v31 = vadd.f32 %v790_v0, %v701_v63  ;;  %v1121_v25 = vpop.f32.mrf.mxu2 }
 0x16e   : > { %v703_v2 = vpop.f32.mrf.mxu0 }
 0x16f   : > { %829 = vmatmul.bf16.gmra.mxu1 %v1645_v62  ;;  %v849_v4 = vpack.c.bf16 %v791_v31, %v791_v31 }
 0x171   : > { %v913_v26 = vunpack.c.l.b16 %v849_v4 }
 0x174   : > { %v792_v3 = vpop.f32.mrf.mxu1 }
 0x175   : > { %v793_v20 = vadd.f32 %v792_v3, %v703_v2  ;;  %v1124_v61 = vpop.f32.mrf.mxu2  ;;  %1178 = vmatmul.bf16.gmra.mxu2 %v2394_v17 }
 0x176   : > { %v706_v9 = vpop.f32.mrf.mxu0 }
 0x177   : > { %v850_v6 = vpack.c.bf16 %v793_v20, %v793_v20  ;;  %v1115_v20 = vadd.f32 %v2468_v18, %v1114_v32 }
 0x179   : > { %v914_v7 = vunpack.c.l.b16 %v850_v6 }
 0x17b   : > { %v938_v8 = vpack.c.b16 %v914_v7, %v913_v26 }
 0x17c   : > { %v795_v10 = vpop.f32.mrf.mxu1 }
 0x17d   : > { %1227 = vmatmul.bf16.gmra.mxu3 %v938_v8  ;;  %v796_v12 = vadd.f32 %v795_v10, %v706_v9  ;;  %v1126_v23 = vpop.f32.mrf.mxu2 }
 0x17e   : > { %v708_v13 = vpop.f32.mrf.mxu0 }
 0x17f   : > { %v851_v29 = vpack.c.bf16 %v796_v12, %v796_v12  ;;  %v1117_v12 = vadd.f32 %v2468_v18, %v1116_v39 }
 0x181   : > { %v915_v34 = vunpack.c.l.b16 %v851_v29 }
 0x184   : > { %v797_v14 = vpop.f32.mrf.mxu1 }
 0x185   : > { %v798_v15 = vadd.f32 %v797_v14, %v708_v13  ;;  %v1129_v11 = vpop.f32.mrf.mxu2 }
 0x186   : > { %v711_v37 = vpop.f32.mrf.mxu0 }
 0x187   : > { %v852_v33 = vpack.c.bf16 %v798_v15, %v798_v15 }
 0x189   : > { %v916_v35 = vunpack.c.l.b16 %v852_v33 }
 0x18b   : > { %v939_v36 = vpack.c.b16 %v916_v35, %v915_v34 }
 0x18c   : > { %v800_v38 = vpop.f32.mrf.mxu1 }
 0x18d   : > { %1232 = vmatmul.bf16.gmra.mxu3 %v939_v36  ;;  %v801_v41 = vadd.f32 %v800_v38, %v711_v37  ;;  %v1120_v36 = vadd.f32 %v2468_v18, %v1119_v46  ;;  %v1131_v21 = vpop.f32.mrf.mxu2 }
 0x18e   : > { %v713_v42 = vpop.f32.mrf.mxu0 }
 0x18f   : > { %v853_v44 = vpack.c.bf16 %v801_v41, %v801_v41 }
 0x190   : > { %v1193_v40 = vpop.f32.mrf.mxu3 }
 0x191   : > { %v2471_v27 = vadd.f32 %v1193_v40, %v1105_v24  ;;  %v917_v50 = vunpack.c.l.b16 %v853_v44  ;;  %v1122_v44 = vadd.f32 %v2468_v18, %v1121_v25 }
 0x194   : > { %v802_v43 = vpop.f32.mrf.mxu1 }
 0x195   : > { %v803_v45 = vadd.f32 %v802_v43, %v713_v42  ;;  %v1134_v43 = vpop.f32.mrf.mxu2 }
 0x196   : > { %v716_v30 = vpop.f32.mrf.mxu0 }
 0x197   : > { %v854_v48 = vpack.c.bf16 %v803_v45, %v803_v45 }
 0x198   : > { %v1195_v49 = vpop.f32.mrf.mxu3 }
 0x199   : > { %v918_v16 = vunpack.c.l.b16 %v854_v48  ;;  %v2475_v51 = vadd.f32 %v1195_v49, %v1107_v47 }
 0x19b   : > { %v940_v52 = vpack.c.b16 %v918_v16, %v917_v50 }
 0x19c   : > { %v805_v53 = vpop.f32.mrf.mxu1 }
 0x19d   : > { %1237 = vmatmul.bf16.gmra.mxu3 %v940_v52  ;;  %v806_v55 = vadd.f32 %v805_v53, %v716_v30  ;;  %v1125_v30 = vadd.f32 %v2468_v18, %v1124_v61  ;;  %v1136_v19 = vpop.f32.mrf.mxu2 }
 0x19e   : > { %v718_v57 = vpop.f32.mrf.mxu0 }
 0x19f   : > { %v855_v59 = vpack.c.bf16 %v806_v55, %v806_v55 }
 0x1a0   : > { %v1198_v54 = vpop.f32.mrf.mxu3 }
 0x1a1   : > { %v2478_v56 = vadd.f32 %v1198_v54, %v1110_v22  ;;  %v919_v0 = vunpack.c.l.b16 %v855_v59  ;;  %v1127_v59 = vadd.f32 %v2468_v18, %v1126_v23 }
 0x1a4   : > { %v807_v58 = vpop.f32.mrf.mxu1 }
 0x1a5   : > { %v808_v60 = vadd.f32 %v807_v58, %v718_v57  ;;  %v1139_v61 = vpop.f32.mrf.mxu2 }
 0x1a6   : > { %v721_v3 = vpop.f32.mrf.mxu0 }
 0x1a7   : > { %v856_v62 = vpack.c.bf16 %v808_v60, %v808_v60 }
 0x1a8   : > { %v1200_v63 = vpop.f32.mrf.mxu3 }
 0x1a9   : > { %v920_v1 = vunpack.c.l.b16 %v856_v62  ;;  %v2482_v31 = vadd.f32 %v1200_v63, %v1112_v28 }
 0x1ab   : > { %v941_v2 = vpack.c.b16 %v920_v1, %v919_v0 }
 0x1ac   : > { %v810_v4 = vpop.f32.mrf.mxu1 }
 0x1ad   : > { %1242 = vmatmul.bf16.gmra.mxu3 %v941_v2  ;;  %v811_v6 = vadd.f32 %v810_v4, %v721_v3  ;;  %v1130_v4 = vadd.f32 %v2468_v18, %v1129_v11 }
 0x1ae   : > { %v723_v7 = vpop.f32.mrf.mxu0 }
 0x1af   : > { %v857_v9 = vpack.c.bf16 %v811_v6, %v811_v6  ;;  %v1141_v6 = vpop.f32.mrf.mxu2 }
 0x1b0   : > { %v1203_v5 = vpop.f32.mrf.mxu3 }
 0x1b1   : > { %v2485_v26 = vadd.f32 %v1203_v5, %v1115_v20  ;;  %v921_v29 = vunpack.c.l.b16 %v857_v9 }
 0x1b4   : > { %v812_v8 = vpop.f32.mrf.mxu1 }
 0x1b5   : > { %v813_v10 = vadd.f32 %v812_v8, %v723_v7 }
 0x1b6   : > { %v726_v34 = vpop.f32.mrf.mxu0 }
 0x1b7   : > { %v858_v13 = vpack.c.bf16 %v813_v10, %v813_v10  ;;  %v1132_v10 = vadd.f32 %v2468_v18, %v1131_v21 }
 0x1b8   : > { %v1205_v14 = vpop.f32.mrf.mxu3 }
 0x1b9   : > { %v922_v15 = vunpack.c.l.b16 %v858_v13  ;;  %v2489_v32 = vadd.f32 %v1205_v14, %v1117_v12 }
 0x1bb   : > { %v942_v33 = vpack.c.b16 %v922_v15, %v921_v29 }
 0x1bc   : > { %v815_v35 = vpop.f32.mrf.mxu1 }
 0x1bd   : > { %1247 = vmatmul.bf16.gmra.mxu3 %v942_v33  ;;  %v816_v38 = vadd.f32 %v815_v35, %v726_v34  ;;  %v1135_v35 = vadd.f32 %v2468_v18, %v1134_v43 }
 0x1be   : > { %v728_v39 = vpop.f32.mrf.mxu0 }
 0x1bf   : > { %v859_v41 = vpack.c.bf16 %v816_v38, %v816_v38 }
 0x1c0   : > { %v1208_v37 = vpop.f32.mrf.mxu3 }
 0x1c1   : > { %v2492_v24 = vadd.f32 %v1208_v37, %v1120_v36  ;;  %v923_v48 = vunpack.c.l.b16 %v859_v41  ;;  %v1144_v36 = vpop.f32.mrf.mxu2 }
 0x1c4   : > { %v817_v40 = vpop.f32.mrf.mxu1 }
 0x1c5   : > { %v818_v42 = vadd.f32 %v817_v40, %v728_v39 }
 0x1c6   : > { %v731_v16 = vpop.f32.mrf.mxu0 }
 0x1c7   : > { %v860_v45 = vpack.c.bf16 %v818_v42, %v818_v42 }
 0x1c8   : > { %v1210_v47 = vpop.f32.mrf.mxu3 }
 0x1c9   : > { %v924_v49 = vunpack.c.l.b16 %v860_v45  ;;  %v2496_v46 = vadd.f32 %v1210_v47, %v1122_v44  ;;  %v1137_v44 = vadd.f32 %v2468_v18, %v1136_v19 }
 0x1cb   : > { %v943_v50 = vpack.c.b16 %v924_v49, %v923_v48  ;;  %v1146_v48 = vpop.f32.mrf.mxu2 }
 0x1cc   : > { %v820_v52 = vpop.f32.mrf.mxu1 }
 0x1cd   : > { %1252 = vmatmul.bf16.gmra.mxu3 %v943_v50  ;;  %v821_v22 = vadd.f32 %v820_v52, %v731_v16  ;;  %v1140_v52 = vadd.f32 %v2468_v18, %v1139_v61 }
 0x1ce   : > { %v733_v25 = vpop.f32.mrf.mxu0 }
 0x1cf   : > { %v861_v57 = vpack.c.bf16 %v821_v22, %v821_v22 }
 0x1d0   : > { %v1213_v53 = vpop.f32.mrf.mxu3 }
 0x1d1   : > { %v2499_v54 = vadd.f32 %v1213_v53, %v1125_v30  ;;  %v925_v62 = vunpack.c.l.b16 %v861_v57 }
 0x1d3   : > { %v1149_v22 = vpop.f32.mrf.mxu2 }
 0x1d4   : > { %v822_v55 = vpop.f32.mrf.mxu1 }
 0x1d5   : > { %v823_v58 = vadd.f32 %v822_v55, %v733_v25  ;;  %v1142_v25 = vadd.f32 %v2468_v18, %v1141_v6 }
 0x1d6   : > { %v736_v2 = vpop.f32.mrf.mxu0 }
 0x1d7   : > { %v862_v60 = vpack.c.bf16 %v823_v58, %v823_v58  ;;  %v1145_v58 = vadd.f32 %v2468_v18, %v1144_v36 }
 0x1d8   : > { %v1215_v28 = vpop.f32.mrf.mxu3 }
 0x1d9   : > { %v926_v63 = vunpack.c.l.b16 %v862_v60  ;;  %v2503_v0 = vadd.f32 %v1215_v28, %v1127_v59 }
 0x1db   : > { %v944_v1 = vpack.c.b16 %v926_v63, %v925_v62  ;;  %v1151_v19 = vpop.f32.mrf.mxu2  ;;  %v1147_v62 = vadd.f32 %v2468_v18, %v1146_v48 }
 0x1dc   : > { %v825_v3 = vpop.f32.mrf.mxu1 }
 0x1dd   : > { %1257 = vmatmul.bf16.gmra.mxu3 %v944_v1  ;;  %v826_v20 = vadd.f32 %v825_v3, %v736_v2  ;;  %v1150_v1 = vadd.f32 %v2468_v18, %v1149_v22 }
 0x1de   : > { %v738_v7 = vpop.f32.mrf.mxu0 }
 0x1df   : > { %v863_v8 = vpack.c.bf16 %v826_v20, %v826_v20 }
 0x1e0   : > { %v1218_v17 = vpop.f32.mrf.mxu3 }
 0x1e1   : > { %v2506_v5 = vadd.f32 %v1218_v17, %v1130_v4  ;;  %v927_v14 = vunpack.c.l.b16 %v863_v8  ;;  %v1152_v17 = vadd.f32 %v2468_v18, %v1151_v19 }
 0x1e3   : > { %v1154_v28 = vpop.f32.mrf.mxu2 }
 0x1e4   : > { %v827_v23 = vpop.f32.mrf.mxu1 }
 0x1e5   : > { %v828_v9 = vadd.f32 %v827_v23, %v738_v7  ;;  %v1155_v23 = vadd.f32 %v2468_v18, %v1154_v28 }
 0x1e6   : > { %v741_v11 = vpop.f32.mrf.mxu0 }
 0x1e7   : > { %v864_v12 = vpack.c.bf16 %v828_v9, %v828_v9 }
 0x1e8   : > { %v1220_v13 = vpop.f32.mrf.mxu3 }
 0x1e9   : > { %v928_v29 = vunpack.c.l.b16 %v864_v12  ;;  %v2509_v15 = vadd.f32 %v1220_v13, %v1132_v10 }
 0x1eb   : > { %v945_v33 = vpack.c.b16 %v928_v29, %v927_v14  ;;  %v1156_v3 = vpop.f32.mrf.mxu2 }
 0x1ec   : > { %v830_v34 = vpop.f32.mrf.mxu1  ;;  %v1157_v12 = vadd.f32 %v2468_v18, %v1156_v3 }
 0x1ed   : > { %1262 = vmatmul.bf16.gmra.mxu3 %v945_v33  ;;  %v831_v38 = vadd.f32 %v830_v34, %v741_v11 }
 0x1ee   : > { %v743_v40 = vpop.f32.mrf.mxu0 }
 0x1ef   : > { %v865_v21 = vpack.c.bf16 %v831_v38, %v831_v38 }
 0x1f0   : > { %v1223_v37 = vpop.f32.mrf.mxu3 }
 0x1f1   : > { %v2512_v39 = vadd.f32 %v1223_v37, %v1135_v35  ;;  %v929_v49 = vunpack.c.l.b16 %v865_v21 }
 0x1f3   : > { %v1159_v7 = vpop.f32.mrf.mxu2 }
 0x1f4   : > { %v832_v41 = vpop.f32.mrf.mxu1  ;;  %v1160_v29 = vadd.f32 %v2468_v18, %v1159_v7 }
 0x1f5   : > { %v833_v42 = vadd.f32 %v832_v41, %v743_v40 }
 0x1f7   : > { %v866_v45 = vpack.c.bf16 %v833_v42, %v833_v42 }
 0x1f8   : > { %v1225_v47 = vpop.f32.mrf.mxu3 }
 0x1f9   : > { %v930_v50 = vunpack.c.l.b16 %v866_v45  ;;  %v2515_v16 = vadd.f32 %v1225_v47, %v1137_v44 }
 0x1fb   : > { %v946_v43 = vpack.c.b16 %v930_v50, %v929_v49  ;;  %v1161_v10 = vpop.f32.mrf.mxu2 }
 0x1fc   : > { %v1162_v35 = vadd.f32 %v2468_v18, %v1161_v10 }
 0x1fd   : > { %1267 = vmatmul.bf16.gmra.mxu3 %v946_v43 }
 0x200   : > { %v1228_v30 = vpop.f32.mrf.mxu3 }
 0x201   : > { %v2518_v53 = vadd.f32 %v1228_v30, %v1140_v52 }
 0x203   : > { %v1164_v33 = vpop.f32.mrf.mxu2 }
 0x204   : > { %v1165_v40 = vadd.f32 %v2468_v18, %v1164_v33 }
 0x208   : > { %v1230_v55 = vpop.f32.mrf.mxu3 }
 0x209   : > { %v2521_v57 = vadd.f32 %v1230_v55, %v1142_v25 }
 0x20b   : > { %v1166_v37 = vpop.f32.mrf.mxu2 }
 0x20c   : > { %v1167_v44 = vadd.f32 %v2468_v18, %v1166_v37 }
 0x210   : > { %v1233_v59 = vpop.f32.mrf.mxu3 }
 0x211   : > { %v2524_v60 = vadd.f32 %v1233_v59, %v1145_v58 }
 0x213   : > { %v1169_v42 = vpop.f32.mrf.mxu2 }
 0x214   : > { %v1170_v49 = vadd.f32 %v2468_v18, %v1169_v42 }
 0x218   : > { %v1235_v63 = vpop.f32.mrf.mxu3 }
 0x219   : > { %v2527_v61 = vadd.f32 %v1235_v63, %v1147_v62 }
 0x21b   : > { %v1171_v48 = vpop.f32.mrf.mxu2 }
 0x21c   : > { %v1172_v30 = vadd.f32 %v2468_v18, %v1171_v48 }
 0x220   : > { %v1238_v2 = vpop.f32.mrf.mxu3 }
 0x221   : > { %v2530_v4 = vadd.f32 %v1238_v2, %v1150_v1 }
 0x223   : > { %v1174_v52 = vpop.f32.mrf.mxu2 }
 0x224   : > { %v1175_v55 = vadd.f32 %v2468_v18, %v1174_v52 }
 0x228   : > { %v1240_v20 = vpop.f32.mrf.mxu3 }
 0x229   : > { %v2533_v6 = vadd.f32 %v1240_v20, %v1152_v17 }
 0x22b   : > { %v1176_v19 = vpop.f32.mrf.mxu2 }
 0x22c   : > { %v1177_v28 = vadd.f32 %v2468_v18, %v1176_v19 }
 0x230   : > { %v1243_v8 = vpop.f32.mrf.mxu3 }
 0x231   : > { %v2536_v9 = vadd.f32 %v1243_v8, %v1155_v23 }
 0x233   : > { %v1179_v1 = vpop.f32.mrf.mxu2 }
 0x234   : > { %v1180_v2 = vadd.f32 %v2468_v18, %v1179_v1 }
 0x238   : > { %v1245_v13 = vpop.f32.mrf.mxu3 }
 0x239   : > { %v2539_v14 = vadd.f32 %v1245_v13, %v1157_v12 }
 0x23b   : > { %v1181_v20 = vpop.f32.mrf.mxu2 }
 0x23c   : > { %v1182_v7 = vadd.f32 %v2468_v18, %v1181_v20 }
 0x240   : > { %v1248_v11 = vpop.f32.mrf.mxu3 }
 0x241   : > { %v2542_v34 = vadd.f32 %v1248_v11, %v1160_v29 }
 0x248   : > { %v1250_v36 = vpop.f32.mrf.mxu3 }
 0x249   : > { %v2545_v38 = vadd.f32 %v1250_v36, %v1162_v35 }
 0x250   : > { %v1253_v41 = vpop.f32.mrf.mxu3 }
 0x251   : > { %v2548_v21 = vadd.f32 %v1253_v41, %v1165_v40 }
 0x258   : > { %v1255_v45 = vpop.f32.mrf.mxu3 }
 0x259   : > { %v2551_v47 = vadd.f32 %v1255_v45, %v1167_v44 }
 0x260   : > { %v1258_v50 = vpop.f32.mrf.mxu3 }
 0x261   : > { %v2554_v43 = vadd.f32 %v1258_v50, %v1170_v49 }
 0x268   : > { %v1260_v22 = vpop.f32.mrf.mxu3 }
 0x269   : > { %v2557_v25 = vadd.f32 %v1260_v22, %v1172_v30 }
 0x270   : > { %v1263_v58 = vpop.f32.mrf.mxu3 }
 0x271   : > { %v2560_v59 = vadd.f32 %v1263_v58, %v1175_v55 }
 0x278   : > { %v1265_v62 = vpop.f32.mrf.mxu3 }
 0x279   : > { %v2563_v63 = vadd.f32 %v1265_v62, %v1177_v28 }
 0x280   : > { %v1268_v3 = vpop.f32.mrf.mxu3 }
 0x281   : > { %v2566_v17 = vadd.f32 %v1268_v3, %v1180_v2 }
 0x285   : > { %1276 = sbr.rel (%p1774_p1) target bundleno = 670 (0x29e), region = 60 }
 0x288   : > { %v1270_v23 = vpop.f32.mrf.mxu3 }
 0x289   : > { %v2569_v8 = vadd.f32 %v1270_v23, %v1182_v7 }
 0x28a   : > { %v1277_v10 = vmax.f32 %v2471_v27, 0.0  ;;  %v1278_v12 = vmax.f32 %v2475_v51, 0.0  ;;  %v1279_v13 = vmax.f32 %v2478_v56, 0.0  ;;  %v1280_v29 = vmax.f32 %v2482_v31, 0.0 }
 0x28b   : > { %v1281_v33 = vmax.f32 %v2485_v26, 0.0  ;;  %v1282_v11 = vmax.f32 %v2489_v32, 0.0  ;;  %v1283_v18 = vmax.f32 %v2492_v24, 0.0  ;;  %v1284_v35 = vmax.f32 %v2496_v46, 0.0 }
 0x28c   : > { %v1848_v36 = vpack.c.bf16 %v1278_v12, %v1277_v10  ;;  %v1853_v37 = vpack.c.bf16 %v1280_v29, %v1279_v13  ;;  %v1285_v40 = vmax.f32 %v2499_v54, 0.0  ;;  %v1286_v41 = vmax.f32 %v2503_v0, 0.0 }
 0x28d   : > { %v1858_v42 = vpack.c.bf16 %v1282_v11, %v1281_v33  ;;  %v1863_v44 = vpack.c.bf16 %v1284_v35, %v1283_v18  ;;  %v1287_v45 = vmax.f32 %v2506_v5, 0.0  ;;  %v1288_v48 = vmax.f32 %v2509_v15, 0.0 }
 0x28e   : > { %1849 = vst [vmem:[#allocation2] sm:$0xff] %v1848_v36   ;;  %v1868_v49 = vpack.c.bf16 %v1286_v41, %v1285_v40  ;;  %v1289_v50 = vmax.f32 %v2512_v39, 0.0  ;;  %v1290_v52 = vmax.f32 %v2515_v16, 0.0  ;;  %v1291_v30 = vmax.f32 %v2518_v53, 0.0 }
 0x28f   : > { %1925 = vst [vmem:[#allocation2 + $0x8] sm:$0xff] %v1853_v37   ;;  %v1873_v22 = vpack.c.bf16 %v1288_v48, %v1287_v45  ;;  %v1292_v55 = vmax.f32 %v2521_v57, 0.0  ;;  %v1293_v19 = vmax.f32 %v2524_v60, 0.0  ;;  %v1294_v58 = vmax.f32 %v2527_v61, 0.0 }
 0x290   : > { %1926 = vst [vmem:[#allocation2 + $0x10] sm:$0xff] %v1858_v42   ;;  %v1878_v28 = vpack.c.bf16 %v1290_v52, %v1289_v50  ;;  %v1295_v62 = vmax.f32 %v2530_v4, 0.0  ;;  %v1296_v1 = vmax.f32 %v2533_v6, 0.0  ;;  %v1297_v2 = vmax.f32 %v2536_v9, 0.0 }
 0x291   : > { %1927 = vst [vmem:[#allocation2 + $0x18] sm:$0xff] %v1863_v44   ;;  %v1883_v3 = vpack.c.bf16 %v1292_v55, %v1291_v30  ;;  %v1298_v20 = vmax.f32 %v2539_v14, 0.0  ;;  %v1299_v7 = vmax.f32 %v2542_v34, 0.0  ;;  %v1888_v23 = vpack.c.bf16 %v1294_v58, %v1293_v19 }
 0x292   : > { %1928 = vst [vmem:[#allocation2 + $0x20] sm:$0xff] %v1868_v49   ;;  %v1300_v10 = vmax.f32 %v2545_v38, 0.0  ;;  %v1301_v12 = vmax.f32 %v2548_v21, 0.0  ;;  %v1302_v13 = vmax.f32 %v2551_v47, 0.0  ;;  %v1893_v29 = vpack.c.bf16 %v1296_v1, %v1295_v62 }
 0x293   : > { %1929 = vst [vmem:[#allocation2 + $0x28] sm:$0xff] %v1873_v22   ;;  %v1303_v33 = vmax.f32 %v2554_v43, 0.0  ;;  %v1304_v11 = vmax.f32 %v2557_v25, 0.0  ;;  %v1898_v18 = vpack.c.bf16 %v1298_v20, %v1297_v2  ;;  %v1305_v35 = vmax.f32 %v2560_v59, 0.0 }
 0x294   : > { %1930 = vst [vmem:[#allocation2 + $0x30] sm:$0xff] %v1878_v28   ;;  %v1306_v36 = vmax.f32 %v2563_v63, 0.0  ;;  %v1903_v37 = vpack.c.bf16 %v1300_v10, %v1299_v7  ;;  %v1307_v40 = vmax.f32 %v2566_v17, 0.0  ;;  %v1308_v41 = vmax.f32 %v2569_v8, 0.0 }
 0x295   : > { %1931 = vst [vmem:[#allocation2 + $0x38] sm:$0xff] %v1883_v3   ;;  %v1908_v42 = vpack.c.bf16 %v1302_v13, %v1301_v12  ;;  %v1913_v44 = vpack.c.bf16 %v1304_v11, %v1303_v33 }
 0x296   : > { %1932 = vst [vmem:[#allocation2 + $0x40] sm:$0xff] %v1888_v23   ;;  %v1918_v45 = vpack.c.bf16 %v1306_v36, %v1305_v35  ;;  %v1923_v48 = vpack.c.bf16 %v1308_v41, %v1307_v40 }
 0x297   : > { %1933 = vst [vmem:[#allocation2 + $0x48] sm:$0xff] %v1893_v29  }
 0x298   : > { %1934 = vst [vmem:[#allocation2 + $0x50] sm:$0xff] %v1898_v18  }
 0x299   : > { %1935 = vst [vmem:[#allocation2 + $0x58] sm:$0xff] %v1903_v37  }
 0x29a   : > { %1936 = vst [vmem:[#allocation2 + $0x60] sm:$0xff] %v1908_v42  }
 0x29b   : > { %1937 = vst [vmem:[#allocation2 + $0x68] sm:$0xff] %v1913_v44  }
 0x29c   : > { %1938 = vst [vmem:[#allocation2 + $0x70] sm:$0xff] %v1918_v45  }
 0x29d   : > { %1939 = vst [vmem:[#allocation2 + $0x78] sm:$0xff] %v1923_v48  }
 0x29e PF: > { %p1775_p4 = scmp.ne.s32.totalorder %s2268_s19, 3 }
 0x2a0   : > { %1376 = sbr.rel (%p1775_p4) target bundleno = 709 (0x2c5), region = 64 }
 0x2a5   : > { %1377 = vst [vmem:[#allocation10] sm:$0xff] %v2471_v27 }
 0x2a6   : > { %1378 = vst [vmem:[#allocation10 + $0x8] sm:$0xff] %v2475_v51 }
 0x2a7   : > { %1379 = vst [vmem:[#allocation10 + $0x10] sm:$0xff] %v2478_v56 }
 0x2a8   : > { %1380 = vst [vmem:[#allocation10 + $0x18] sm:$0xff] %v2482_v31 }
 0x2a9   : > { %1381 = vst [vmem:[#allocation10 + $0x20] sm:$0xff] %v2485_v26 }
 0x2aa   : > { %1382 = vst [vmem:[#allocation10 + $0x28] sm:$0xff] %v2489_v32 }
 0x2ab   : > { %1383 = vst [vmem:[#allocation10 + $0x30] sm:$0xff] %v2492_v24 }
 0x2ac   : > { %1384 = vst [vmem:[#allocation10 + $0x38] sm:$0xff] %v2496_v46 }
 0x2ad   : > { %1385 = vst [vmem:[#allocation10 + $0x40] sm:$0xff] %v2499_v54 }
 0x2ae   : > { %1386 = vst [vmem:[#allocation10 + $0x48] sm:$0xff] %v2503_v0 }
 0x2af   : > { %1387 = vst [vmem:[#allocation10 + $0x50] sm:$0xff] %v2506_v5 }
 0x2b0   : > { %1388 = vst [vmem:[#allocation10 + $0x58] sm:$0xff] %v2509_v15 }
 0x2b1   : > { %1389 = vst [vmem:[#allocation10 + $0x60] sm:$0xff] %v2512_v39 }
 0x2b2   : > { %1390 = vst [vmem:[#allocation10 + $0x68] sm:$0xff] %v2515_v16 }
 0x2b3   : > { %1391 = vst [vmem:[#allocation10 + $0x70] sm:$0xff] %v2518_v53 }
 0x2b4   : > { %1392 = vst [vmem:[#allocation10 + $0x78] sm:$0xff] %v2521_v57 }
 0x2b5   : > { %1393 = vst [vmem:[#allocation10 + $0x80] sm:$0xff] %v2524_v60 }
 0x2b6   : > { %1394 = vst [vmem:[#allocation10 + $0x88] sm:$0xff] %v2527_v61 }
 0x2b7   : > { %1395 = vst [vmem:[#allocation10 + $0x90] sm:$0xff] %v2530_v4 }
 0x2b8   : > { %1396 = vst [vmem:[#allocation10 + $0x98] sm:$0xff] %v2533_v6 }
 0x2b9   : > { %1397 = vst [vmem:[#allocation10 + $0xa0] sm:$0xff] %v2536_v9 }
 0x2ba   : > { %1398 = vst [vmem:[#allocation10 + $0xa8] sm:$0xff] %v2539_v14 }
 0x2bb   : > { %1399 = vst [vmem:[#allocation10 + $0xb0] sm:$0xff] %v2542_v34 }
 0x2bc   : > { %1400 = vst [vmem:[#allocation10 + $0xb8] sm:$0xff] %v2545_v38 }
 0x2bd   : > { %1401 = vst [vmem:[#allocation10 + $0xc0] sm:$0xff] %v2548_v21 }
 0x2be   : > { %1402 = vst [vmem:[#allocation10 + $0xc8] sm:$0xff] %v2551_v47 }
 0x2bf   : > { %1403 = vst [vmem:[#allocation10 + $0xd0] sm:$0xff] %v2554_v43 }
 0x2c0   : > { %1404 = vst [vmem:[#allocation10 + $0xd8] sm:$0xff] %v2557_v25 }
 0x2c1   : > { %1405 = vst [vmem:[#allocation10 + $0xe0] sm:$0xff] %v2560_v59 }
 0x2c2   : > { %1406 = vst [vmem:[#allocation10 + $0xe8] sm:$0xff] %v2563_v63 }
 0x2c3   : > { %1407 = vst [vmem:[#allocation10 + $0xf0] sm:$0xff] %v2566_v17 }
 0x2c4   : > { %1408 = vst [vmem:[#allocation10 + $0xf8] sm:$0xff] %v2569_v8 }
 0x2c5 PF: > { %p1975_p5 = scmp.eq.s32.totalorder %s2268_s19, 3  ;;  %s2221_s20 = smov [#allocation10]  }
 0x2c6   : > { %s1414_s12 = sshll.u32 %s2221_s20, 4  ;;  %s1416_s6 = sshll.u32 %s2658_s4, 4  ;;  %s1415_s12 = int_to_ptr.vmem [resolvable:$true] %s1414_s12  ;;  %s1417_s6 = int_to_ptr.hbm [resolvable:$true] %s1416_s6 }
 0x2c7   : > { %s2222_s9 = smov 128   ;;  %s2223_s10 = smov 8  }
 0x2c8   : > { %1953 = dma.vmem_to_hbm [thread:$0]  (%p1975_p5), %s1415_s12, 4096, %s1417_s6, [#allocation5], %s2222_s9, %s2222_s9, %s2223_s10  }
 0x2c9   : > { %2196 = dma.done.wait (%p1975_p5), [#allocation5], 4096  }
 0x2ca   : > { %2198 = vsyncadd (%p1975_p5), [#allocation5], 4294963200 }
 0x2cb PF: > { %p14_p6 = scmp.ge.s32.totalorder %s2297_s28, 6   ;;  %s2669_s15 = smov %s2205_s16 }
 0x2cc   : > { %s2670_s16 = smov %s2209_s17  ;;  %s2671_s17 = smov %s2312_s7 }
 0x2cd   : > { %s2672_s18 = smov %s2297_s28  ;;  %16 = sbr.rel (!%p14_p6) target bundleno = 7 (0x7), region = 103 }
 0x2d2   :  { %1433 = vsyncpa [#allocation4], 1 }
 0x2d3   :  { %1435 = vsyncpa [#allocation4 + $0x1], 1 }
 0x2d4   :  { %1436 = vsyncpa [#allocation7], 1 }
 0x2d5   :  { %1437 = vsyncpa [#allocation5], 1 }
 0x2d6   :  { %1439 = vsyncpa [#allocation5 + $0x1], 1 }

</bundles_post_ra>
